<compile_context>
chip_gen: v5e
topology: v5e:2x2
jax: 0.10.0
libtpu: 0.0.40
codegen_flags: <defaults>
</compile_context>

<pallas_src>
import jax
import jax.numpy as jnp
from jax.experimental import pallas as pl
from jax.experimental.pallas import tpu as pltpu

HIDDEN = 128  # latent_dim of the module


def mlp_reward_kernel(a_ref, s_ref, wa_ref, ws_ref, w23_ref, b_ref, w4_ref, b4_ref, out_ref):
    """One batch tile of the MlpRewardModel forward.

    a_ref   : (TILE_B, A) f32  raw actions
    s_ref   : (TILE_B, S) f32  raw states
    wa_ref  : (A, 128)    compute dtype   Wa @ W1[:2]   (action encoder folded into layer 1)
    ws_ref  : (S, 128)    compute dtype   W1[2:]
    w23_ref : (2, 128, 128) compute dtype W2, W3
    b_ref   : (3, 128) f32  rows = b1_fused, b2, b3
    w4_ref  : (128, 1)    compute dtype   final Linear(128 -> 1) weight
    b4_ref  : (1,) f32    final bias (SMEM scalar)
    out_ref : (TILE_B, 1) f32
    """
    f32 = jnp.float32
    cdt = w23_ref.dtype

    # Cast raw f32 inputs to the compute dtype in-kernel (VPU cast, hidden under DMA).
    a = a_ref[...].astype(cdt)
    s = s_ref[...].astype(cdt)

    # layer 1: encoder folded in; two small-K MXU dots over only the real data
    h = (jnp.dot(a, wa_ref[...], preferred_element_type=f32)
         + jnp.dot(s, ws_ref[...], preferred_element_type=f32))
    h = jnp.maximum(h + b_ref[0:1, :], 0.0)

    # layer 2
    h = jnp.dot(h.astype(cdt), w23_ref[0], preferred_element_type=f32)
    h = jnp.maximum(h + b_ref[1:2, :], 0.0)

    # layer 3
    h = jnp.dot(h.astype(cdt), w23_ref[1], preferred_element_type=f32)
    h = jnp.maximum(h + b_ref[2:3, :], 0.0)

    # head: Linear(128 -> 1) on the MXU (N=1 dot; MXU has large slack, XLU stays free)
    out_ref[...] = (jnp.dot(h.astype(cdt), w4_ref[...], preferred_element_type=f32)
                    + b4_ref[0])


def _round_up(x, m):
    return ((x + m - 1) // m) * m


def _pick_tile(B, tile_b, min_steps=2):
    """Batch tile: multiple of 8 (sublane), <= tile_b, and >= min_steps grid steps when possible."""
    if B <= 8:
        return B  # single block equal to the full dim (always a legal block shape)
    tb = _round_up(pl.cdiv(B, min_steps), 8)
    return max(8, min(tb, tile_b))


def mlp_reward_forward(state, action, fused, *, tile_b=2048):
    """state: (B, S) f32, action: (B, A) f32 -> (B, 1) f32."""
    B, S = state.shape
    A = action.shape[1]

    tb = _pick_tile(B, tile_b)
    grid = (pl.cdiv(B, tb),)  # partial final block is masked by Pallas (rows independent)

    def resident(shape):
        n = len(shape)
        return pl.BlockSpec(shape, lambda i: (0,) * n)  # VMEM-resident weights

    weight_bytes = sum(int(v.size) * v.dtype.itemsize for v in
                       (fused["wa"], fused["ws"], fused["w23"],
                        fused["biases"], fused["w4"], fused["b4"]))
    cost = pl.CostEstimate(
        flops=2 * B * HIDDEN * (A + S + 2 * HIDDEN + 1),
        transcendentals=0,
        bytes_accessed=B * (A + S) * 4 + B * 4 + weight_bytes,
    )

    out = pl.pallas_call(
        mlp_reward_kernel,
        out_shape=jax.ShapeDtypeStruct((B, 1), jnp.float32),
        grid=grid,
        in_specs=[
            pl.BlockSpec((tb, A), lambda i: (i, 0)),            # action tile (f32 in HBM)
            pl.BlockSpec((tb, S), lambda i: (i, 0)),            # state tile  (f32 in HBM)
            resident((A, HIDDEN)),                              # wa_fused
            resident((S, HIDDEN)),                              # w1 state part
            resident((2, HIDDEN, HIDDEN)),                      # w2, w3 packed
            resident((3, HIDDEN)),                              # packed biases (f32)
            resident((HIDDEN, 1)),                              # w4 column
            pl.BlockSpec(memory_space=pltpu.MemorySpace.SMEM),  # b4 scalar
        ],
        out_specs=pl.BlockSpec((tb, 1), lambda i: (i, 0)),
        compiler_params=pltpu.CompilerParams(
            dimension_semantics=("parallel",),   # shard the batch grid across TCs (v7x)
            vmem_limit_bytes=32 * 1024 * 1024,   # ample headroom on v5e/v6e/v7x at these tiles
        ),
        cost_estimate=cost,
    )(action, state, fused["wa"], fused["ws"], fused["w23"],
      fused["biases"], fused["w4"], fused["b4"])
    return out


def init_params(key, state_dim, action_dim, action_latent=2, hidden=HIDDEN):
    """PyTorch-style Linear init: U(-1/sqrt(fan_in), 1/sqrt(fan_in)); W stored (in, out)."""
    def linear(k, fan_in, fan_out):
        kw, kb = jax.random.split(k)
        bound = 1.0 / jnp.sqrt(jnp.float32(fan_in))
        w = jax.random.uniform(kw, (fan_in, fan_out), jnp.float32, -bound, bound)
        b = jax.random.uniform(kb, (1, fan_out), jnp.float32, -bound, bound)
        return w, b

    keys = jax.random.split(key, 5)
    wa, ba = linear(keys[0], action_dim, action_latent)
    w1, b1 = linear(keys[1], action_latent + state_dim, hidden)
    w2, b2 = linear(keys[2], hidden, hidden)
    w3, b3 = linear(keys[3], hidden, hidden)
    w4, b4 = linear(keys[4], hidden, 1)
    return dict(wa=wa, ba=ba, w1=w1, b1=b1, w2=w2, b2=b2, w3=w3, b3=b3, w4=w4, b4=b4)


def fuse_params(params, compute_dtype=jnp.bfloat16):
    """Fold the action encoder into layer 1 (exact algebra) and pack weights for the kernel."""
    wa, ba = params["wa"], params["ba"]        # (A, L), (1, L)
    w1, b1 = params["w1"], params["b1"]        # (L + S, H), (1, H)
    A, L = wa.shape
    w1a, w1s = w1[:L], w1[L:]
    wa_fused = wa @ w1a                        # (A, H)
    b1_fused = ba @ w1a + b1                   # (1, H)
    biases = jnp.concatenate([b1_fused, params["b2"], params["b3"]], axis=0)  # (3, H)
    w23 = jnp.stack([params["w2"], params["w3"]], axis=0)                     # (2, H, H)
    return {
        "wa": wa_fused.astype(compute_dtype),
        "ws": w1s.astype(compute_dtype),
        "w23": w23.astype(compute_dtype),
        "biases": biases.astype(jnp.float32),
        "w4": params["w4"].astype(compute_dtype),          # (H, 1)
        "b4": params["b4"].reshape(1).astype(jnp.float32),
    }


def reference_forward(state, action, params):
    """Pure-JAX mirror of MlpRewardModel.forward (continuous-action branch)."""
    act = action @ params["wa"] + params["ba"]
    x = jnp.concatenate([act, state], axis=-1)
    h = jnp.maximum(x @ params["w1"] + params["b1"], 0.0)
    h = jnp.maximum(h @ params["w2"] + params["b2"], 0.0)
    h = jnp.maximum(h @ params["w3"] + params["b3"], 0.0)
    return h @ params["w4"] + params["b4"]


# TODO(synk): discrete-action branch (nn.Embedding encoder) is not implemented; only the
# continuous nn.Linear encoder path of MlpRewardModel is covered here.

if __name__ == "__main__":
    B, STATE_DIM, ACTION_DIM = 8, 32, 4

    key = jax.random.PRNGKey(0)
    k_state, k_action, k_params, k_state2, k_action2 = jax.random.split(key, 5)
    state = jax.random.normal(k_state, (B, STATE_DIM), jnp.float32)
    action = jax.random.normal(k_action, (B, ACTION_DIM), jnp.float32)
    params = init_params(k_params, STATE_DIM, ACTION_DIM)
    ref = reference_forward(state, action, params)

    # f32 weights: exact check against the reference (single-block path)
    out = jax.block_until_ready(
        mlp_reward_forward(state, action, fuse_params(params, jnp.float32)))
    assert out.shape == (B, 1)
    assert jnp.allclose(out, ref, atol=1e-4, rtol=1e-4), "f32 kernel mismatch vs reference"

    # bf16 weights with f32 accumulation (MXU fast path on all generations): relaxed tolerance
    out_bf16 = jax.block_until_ready(
        mlp_reward_forward(state, action, fuse_params(params, jnp.bfloat16)))
    assert out_bf16.shape == (B, 1)
    assert jnp.allclose(out_bf16, ref, atol=5e-2, rtol=5e-2), "bf16 kernel mismatch vs reference"

    # multi-step grid with a partial final block (no jnp.pad remainder pass)
    B2 = 200
    state2 = jax.random.normal(k_state2, (B2, STATE_DIM), jnp.float32)
    action2 = jax.random.normal(k_action2, (B2, ACTION_DIM), jnp.float32)
    ref2 = reference_forward(state2, action2, params)
    out2 = jax.block_until_ready(
        mlp_reward_forward(state2, action2, fuse_params(params, jnp.float32), tile_b=64))
    assert out2.shape == (B2, 1)
    assert jnp.allclose(out2, ref2, atol=1e-4, rtol=1e-4), "tail/multi-step kernel mismatch"

    print("KERNEL_OK")
</pallas_src>

<mosaic_0001>
module attributes {stable_mosaic.version = 11 : i64} {
  func.func @mlp_reward_kernel(%arg0: i32, %arg1: memref<8x4xf32, #tpu.memory_space<vmem>>, %arg2: memref<8x32xf32, #tpu.memory_space<vmem>>, %arg3: memref<4x128xf32, #tpu.memory_space<vmem>>, %arg4: memref<32x128xf32, #tpu.memory_space<vmem>>, %arg5: memref<2x128x128xf32, #tpu.memory_space<vmem>>, %arg6: memref<3x128xf32, #tpu.memory_space<vmem>>, %arg7: memref<128x1xf32, #tpu.memory_space<vmem>>, %arg8: memref<1xf32, #tpu.memory_space<smem>>, %arg9: memref<8x1xf32, #tpu.memory_space<vmem>>) attributes {dimension_semantics = [#tpu.dimension_semantics<parallel>], iteration_bounds = array<i64: 1>, scalar_prefetch = 0 : i64, scratch_operands = 0 : i64, tpu.core_type = #tpu.core_type<tc>, window_params = [{transform_indices = @transform_0, window_bounds = array<i64: 8, 4>}, {transform_indices = @transform_1, window_bounds = array<i64: 8, 32>}, {pipeline_mode = #tpu.pipeline_mode<synchronous>, transform_indices = @transform_2, window_bounds = array<i64: 4, 128>}, {pipeline_mode = #tpu.pipeline_mode<synchronous>, transform_indices = @transform_3, window_bounds = array<i64: 32, 128>}, {pipeline_mode = #tpu.pipeline_mode<synchronous>, transform_indices = @transform_4, window_bounds = array<i64: 2, 128, 128>}, {pipeline_mode = #tpu.pipeline_mode<synchronous>, transform_indices = @transform_5, window_bounds = array<i64: 3, 128>}, {pipeline_mode = #tpu.pipeline_mode<synchronous>, transform_indices = @transform_6, window_bounds = array<i64: 128, 1>}, {transform_indices = @transform_7, window_bounds = array<i64: 1>}, {transform_indices = @transform_8, window_bounds = array<i64: 8, 1>}]} {
    %c0 = arith.constant 0 : index
    %c0_0 = arith.constant 0 : index
    %0 = vector.load %arg1[%c0, %c0_0] : memref<8x4xf32, #tpu.memory_space<vmem>>, vector<8x4xf32>
    %c0_1 = arith.constant 0 : index
    %c0_2 = arith.constant 0 : index
    %1 = vector.load %arg2[%c0_1, %c0_2] : memref<8x32xf32, #tpu.memory_space<vmem>>, vector<8x32xf32>
    %c0_3 = arith.constant 0 : index
    %c0_4 = arith.constant 0 : index
    %2 = vector.load %arg3[%c0_3, %c0_4] : memref<4x128xf32, #tpu.memory_space<vmem>>, vector<4x128xf32>
    %cst = arith.constant dense<0.000000e+00> : vector<8x128xf32>
    %3 = tpu.matmul %0, %2, %cst {dimension_numbers = #tpu.dot_dimension_numbers<[1], [0], [0], [1], [0, 0, 1, 1], [], []>} : vector<8x4xf32>, vector<4x128xf32>, vector<8x128xf32> -> vector<8x128xf32>
    %c0_5 = arith.constant 0 : index
    %c0_6 = arith.constant 0 : index
    %4 = vector.load %arg4[%c0_5, %c0_6] : memref<32x128xf32, #tpu.memory_space<vmem>>, vector<32x128xf32>
    %cst_7 = arith.constant dense<0.000000e+00> : vector<8x128xf32>
    %5 = tpu.matmul %1, %4, %cst_7 {dimension_numbers = #tpu.dot_dimension_numbers<[1], [0], [0], [1], [0, 0, 1, 1], [], []>} : vector<8x32xf32>, vector<32x128xf32>, vector<8x128xf32> -> vector<8x128xf32>
    %6 = arith.addf %3, %5 : vector<8x128xf32>
    %c0_8 = arith.constant 0 : index
    %c0_9 = arith.constant 0 : index
    %7 = vector.load %arg6[%c0_8, %c0_9] : memref<3x128xf32, #tpu.memory_space<vmem>>, vector<1x128xf32>
    %8 = vector.broadcast %7 : vector<1x128xf32> to vector<8x128xf32>
    %9 = arith.addf %6, %8 : vector<8x128xf32>
    %cst_10 = arith.constant 0.000000e+00 : f32
    %10 = vector.broadcast %cst_10 : f32 to vector<8x128xf32>
    %11 = arith.maximumf %9, %10 : vector<8x128xf32>
    %c0_11 = arith.constant 0 : index
    %c0_12 = arith.constant 0 : index
    %c0_13 = arith.constant 0 : index
    %12 = vector.load %arg5[%c0_11, %c0_12, %c0_13] : memref<2x128x128xf32, #tpu.memory_space<vmem>>, vector<1x128x128xf32>
    %13 = vector.shape_cast %12 : vector<1x128x128xf32> to vector<128x128xf32>
    %cst_14 = arith.constant dense<0.000000e+00> : vector<8x128xf32>
    %14 = tpu.matmul %11, %13, %cst_14 {dimension_numbers = #tpu.dot_dimension_numbers<[1], [0], [0], [1], [0, 0, 1, 1], [], []>} : vector<8x128xf32>, vector<128x128xf32>, vector<8x128xf32> -> vector<8x128xf32>
    %c1 = arith.constant 1 : index
    %c0_15 = arith.constant 0 : index
    %15 = vector.load %arg6[%c1, %c0_15] : memref<3x128xf32, #tpu.memory_space<vmem>>, vector<1x128xf32>
    %16 = vector.broadcast %15 : vector<1x128xf32> to vector<8x128xf32>
    %17 = arith.addf %14, %16 : vector<8x128xf32>
    %cst_16 = arith.constant 0.000000e+00 : f32
    %18 = vector.broadcast %cst_16 : f32 to vector<8x128xf32>
    %19 = arith.maximumf %17, %18 : vector<8x128xf32>
    %c1_17 = arith.constant 1 : index
    %c0_18 = arith.constant 0 : index
    %c0_19 = arith.constant 0 : index
    %20 = vector.load %arg5[%c1_17, %c0_18, %c0_19] : memref<2x128x128xf32, #tpu.memory_space<vmem>>, vector<1x128x128xf32>
    %21 = vector.shape_cast %20 : vector<1x128x128xf32> to vector<128x128xf32>
    %cst_20 = arith.constant dense<0.000000e+00> : vector<8x128xf32>
    %22 = tpu.matmul %19, %21, %cst_20 {dimension_numbers = #tpu.dot_dimension_numbers<[1], [0], [0], [1], [0, 0, 1, 1], [], []>} : vector<8x128xf32>, vector<128x128xf32>, vector<8x128xf32> -> vector<8x128xf32>
    %c2 = arith.constant 2 : index
    %c0_21 = arith.constant 0 : index
    %23 = vector.load %arg6[%c2, %c0_21] : memref<3x128xf32, #tpu.memory_space<vmem>>, vector<1x128xf32>
    %24 = vector.broadcast %23 : vector<1x128xf32> to vector<8x128xf32>
    %25 = arith.addf %22, %24 : vector<8x128xf32>
    %cst_22 = arith.constant 0.000000e+00 : f32
    %26 = vector.broadcast %cst_22 : f32 to vector<8x128xf32>
    %27 = arith.maximumf %25, %26 : vector<8x128xf32>
    %c0_23 = arith.constant 0 : index
    %c0_24 = arith.constant 0 : index
    %28 = vector.load %arg7[%c0_23, %c0_24] : memref<128x1xf32, #tpu.memory_space<vmem>>, vector<128x1xf32>
    %cst_25 = arith.constant dense<0.000000e+00> : vector<8x1xf32>
    %29 = tpu.matmul %27, %28, %cst_25 {dimension_numbers = #tpu.dot_dimension_numbers<[1], [0], [0], [1], [0, 0, 1, 1], [], []>} : vector<8x128xf32>, vector<128x1xf32>, vector<8x1xf32> -> vector<8x1xf32>
    %c0_26 = arith.constant 0 : index
    %30 = memref.load %arg8[%c0_26] : memref<1xf32, #tpu.memory_space<smem>>
    %31 = vector.broadcast %30 : f32 to vector<8x1xf32>
    %32 = arith.addf %29, %31 : vector<8x1xf32>
    %c0_27 = arith.constant 0 : index
    %c0_28 = arith.constant 0 : index
    %33 = vector.load %arg9[%c0_27, %c0_28] : memref<8x1xf32, #tpu.memory_space<vmem>>, vector<8x1xf32>
    tpu.vector_store %arg9[%c0_27, %c0_28], %32 {strides = array<i32>} : memref<8x1xf32, #tpu.memory_space<vmem>>, vector<8x1xf32>,
    return
  }
  func.func @transform_0(%arg0: i32) -> (i32, i32) {
    %c0_i32 = arith.constant 0 : i32
    %c0_i32_0 = arith.constant 0 : i32
    return %arg0, %c0_i32 : i32, i32
  }
  func.func @transform_1(%arg0: i32) -> (i32, i32) {
    %c0_i32 = arith.constant 0 : i32
    %c0_i32_0 = arith.constant 0 : i32
    return %arg0, %c0_i32 : i32, i32
  }
  func.func @transform_2(%arg0: i32) -> (i32, i32) {
    %c0_i32 = arith.constant 0 : i32
    %c0_i32_0 = arith.constant 0 : i32
    %c0_i32_1 = arith.constant 0 : i32
    return %c0_i32, %c0_i32_0 : i32, i32
  }
  func.func @transform_3(%arg0: i32) -> (i32, i32) {
    %c0_i32 = arith.constant 0 : i32
    %c0_i32_0 = arith.constant 0 : i32
    %c0_i32_1 = arith.constant 0 : i32
    return %c0_i32, %c0_i32_0 : i32, i32
  }
  func.func @transform_4(%arg0: i32) -> (i32, i32, i32) {
    %c0_i32 = arith.constant 0 : i32
    %c0_i32_0 = arith.constant 0 : i32
    %c0_i32_1 = arith.constant 0 : i32
    %c0_i32_2 = arith.constant 0 : i32
    return %c0_i32, %c0_i32_0, %c0_i32_1 : i32, i32, i32
  }
  func.func @transform_5(%arg0: i32) -> (i32, i32) {
    %c0_i32 = arith.constant 0 : i32
    %c0_i32_0 = arith.constant 0 : i32
    %c0_i32_1 = arith.constant 0 : i32
    return %c0_i32, %c0_i32_0 : i32, i32
  }
  func.func @transform_6(%arg0: i32) -> (i32, i32) {
    %c0_i32 = arith.constant 0 : i32
    %c0_i32_0 = arith.constant 0 : i32
    %c0_i32_1 = arith.constant 0 : i32
    return %c0_i32, %c0_i32_0 : i32, i32
  }
  func.func @transform_7(%arg0: i32) -> i32 {
    %c0_i32 = arith.constant 0 : i32
    %c0_i32_0 = arith.constant 0 : i32
    return %c0_i32 : i32
  }
  func.func @transform_8(%arg0: i32) -> (i32, i32) {
    %c0_i32 = arith.constant 0 : i32
    %c0_i32_0 = arith.constant 0 : i32
    return %arg0, %c0_i32 : i32, i32
  }
}

</mosaic_0001>

<bundles_post_ra>
// kernel: tpu_custom_call.1
= control target key start
LH: loop header
LB: loop body
LE: loop exit
PB: predicated region body
PF: predicated region fallthrough
CT: control target
= control target key end

     0   :  { %14 = vsyncpa [#allocation4], 0  ;;  %s268_s30 = smov [#allocation3]   ;;  %s269_s10 = smov 128   ;;  %s403_s0 = inlined_call_operand.vmem [shape: f32[8,4], index: 0, kind: input, shape index: {}]   ;;  %s404_s1 = inlined_call_operand.vmem [shape: f32[8,32], index: 1, kind: input, shape index: {}]   ;;  %s405_s2 = inlined_call_operand.vmem [shape: f32[4,128], index: 2, kind: input, shape index: {}]   ;;  %s406_s3 = inlined_call_operand.vmem [shape: f32[32,128], index: 3, kind: input, shape index: {}]   ;;  %s407_s4 = inlined_call_operand.hbm [shape: f32[2,128,128], index: 4, kind: input, shape index: {}]   ;;  %s408_s5 = inlined_call_operand.vmem [shape: f32[3,128], index: 5, kind: input, shape index: {}]   ;;  %s409_s6 = inlined_call_operand.vmem [shape: f32[128,1], index: 6, kind: input, shape index: {}]   ;;  %s410_s7 = inlined_call_operand.<no memory space> [shape: f32[1], index: 7, kind: input, shape index: {}]   ;;  %s411_s8 = inlined_call_operand.vmem [shape: f32[8,1], index: 8, kind: output, shape index: {}]  }
   0x1   :  { %s27_s29 = sshll.u32 %s407_s4, 4  ;;  %s29_s9 = sshll.u32 %s268_s30, 4  ;;  %s28_s29 = int_to_ptr.hbm [resolvable:$true] %s27_s29  ;;  %s30_s9 = int_to_ptr.vmem [resolvable:$true] %s29_s9 }
   0x2   :  { %s270_s11 = smov 8  }
   0x3   :  { %35 = dma.hbm_to_vmem [thread:$0]  %s28_s29, 4096, %s30_s9, [#allocation4], %s269_s10, %s269_s10, %s270_s11  }
   0x4   :  { %266 = dma.done.wait [#allocation4], 4096  }
   0x5   :  { %267 = vsyncadd [#allocation4], 4294963200  ;;  %v52_v0 = vld [vmem:[%s406_s3 + $0x18] sm:$0xff]  ;;  %v51_v1 = vld [vmem:[%s406_s3 + $0x10] sm:$0xff]  ;;  %vm53_vm0 = vcmask 261120   ;;  %vm81_vm1 = vcmask 1043456  }
   0x6   :  { %69 = vmatpush.msra.mxu0 %v52_v0  ;;  %v50_v2 = vld [vmem:[%s406_s3 + $0x8] sm:$0xff]  ;;  %v124_v3 = vld [vmem:[#allocation3 + $0x78] sm:$0xff]  ;;  %v123_v4 = vld [vmem:[#allocation3 + $0x70] sm:$0xff]  ;;  %vm77_vm2 = vcmask 31744   ;;  %vm226_vm3 = vcmask 7168  }
   0x7   :  { %127 = vmatpush.msra.mxu2 %v124_v3  ;;  %v49_v5 = vld [vmem:[%s406_s3] sm:$0xff]  ;;  %v122_v7 = vld [vmem:[#allocation3 + $0x68] sm:$0xff]  ;;  %v120_v10 = vld [vmem:[#allocation3 + $0x58] sm:$0xff] }
   0x8   :  { %70 = vmatpush.msra.mxu0 %v51_v1  ;;  %v47_v6 = vld [vmem:[%s404_s1] sm:$0xff]  ;;  %v119_v11 = vld [vmem:[#allocation3 + $0x50] sm:$0xff]  ;;  %v118_v12 = vld [vmem:[#allocation3 + $0x48] sm:$0xff] }
   0x9   :  { %128 = vmatpush.msra.mxu2 %v123_v4  ;;  %v48_v8 = vld [vmem:[%s405_s2] sm:$0xf]  ;;  %v116_v15 = vld [vmem:[#allocation3 + $0x38] sm:$0xff]  ;;  %v115_v16 = vld [vmem:[#allocation3 + $0x30] sm:$0xff] }
   0xa   :  { %71 = vmatpush.msra.mxu0 %v50_v2  ;;  %v121_v9 = vld [vmem:[#allocation3 + $0x60] sm:$0xff]  ;;  %v114_v17 = vld [vmem:[#allocation3 + $0x28] sm:$0xff]  ;;  %v112_v19 = vld [vmem:[#allocation3 + $0x18] sm:$0xff] }
   0xb   :  { %129 = vmatpush.msra.mxu2 %v122_v7  ;;  %v46_v13 = vld [vmem:[%s403_s0] sm:$0xff]  ;;  %v111_v20 = vld [vmem:[#allocation3 + $0x10] sm:$0xff]  ;;  %v110_v21 = vld [vmem:[#allocation3 + $0x8] sm:$0xff] }
   0xc   :  { %72 = vmatpush.msra.mxu0 %v49_v5  ;;  %v117_v14 = vld [vmem:[#allocation3 + $0x40] sm:$0xff]  ;;  %v164_v23 = vld [vmem:[#allocation3 + $0xf8] sm:$0xff]  ;;  %v163_v24 = vld [vmem:[#allocation3 + $0xf0] sm:$0xff]  ;;  %v205_v5 = vstv %s410_s7 }
   0xd   :  { %233 = vmatmul.msk.f32.vlgmr.msra.gmra.mxu0 %vm53_vm0, %v47_v6  ;;  %130 = vmatpush.msra.mxu2 %v121_v9  ;;  %v113_v18 = vld [vmem:[#allocation3 + $0x20] sm:$0xff]  ;;  %v162_v25 = vld [vmem:[#allocation3 + $0xe8] sm:$0xff]  ;;  %v160_v27 = vld [vmem:[#allocation3 + $0xd8] sm:$0xff] }
   0xe   :  { %234 = vmatpush.msk.msrb.mxu0 %vm81_vm1, %v48_v8  ;;  %v109_v22 = vld [vmem:[#allocation3] sm:$0xff]  ;;  %167 = vmatpush.msra.mxu3 %v164_v23  ;;  %v159_v28 = vld [vmem:[#allocation3 + $0xd0] sm:$0xff]  ;;  %v158_v29 = vld [vmem:[#allocation3 + $0xc8] sm:$0xff] }
   0xf   :  { %131 = vmatpush.msra.mxu2 %v120_v10  ;;  %v161_v26 = vld [vmem:[#allocation3 + $0xe0] sm:$0xff]  ;;  %v156_v31 = vld [vmem:[#allocation3 + $0xb8] sm:$0xff]  ;;  %v155_v32 = vld [vmem:[#allocation3 + $0xb0] sm:$0xff] }
  0x10   :  { %168 = vmatpush.msra.mxu3 %v163_v24  ;;  %v157_v30 = vld [vmem:[#allocation3 + $0xc0] sm:$0xff]  ;;  %v154_v34 = vld [vmem:[#allocation3 + $0xa8] sm:$0xff]  ;;  %v152_v36 = vld [vmem:[#allocation3 + $0x98] sm:$0xff] }
  0x11   :  { %132 = vmatpush.msra.mxu2 %v119_v11  ;;  %v153_v35 = vld [vmem:[#allocation3 + $0xa0] sm:$0xff]  ;;  %v151_v42 = vld [vmem:[#allocation3 + $0x90] sm:$0xff]  ;;  %v150_v43 = vld [vmem:[#allocation3 + $0x88] sm:$0xff] }
  0x12   :  { %169 = vmatpush.msra.mxu3 %v162_v25  ;;  %v239_v37 = vld [vmem:[%s408_s5] ss:$0 sm:$0xff]  ;;  %v203_v45 = vld [vmem:[%s409_s6 + $0x78] sm:$0xff]  ;;  %v202_v46 = vld [vmem:[%s409_s6 + $0x70] sm:$0xff] }
  0x13   :  { %133 = vmatpush.msra.mxu2 %v118_v12  ;;  %v149_v44 = vld [vmem:[#allocation3 + $0x80] sm:$0xff]  ;;  %206 = vmatpush.msra.mxu1 %v203_v45  ;;  %v201_v47 = vld [vmem:[%s409_s6 + $0x68] sm:$0xff]  ;;  %v199_v49 = vld [vmem:[%s409_s6 + $0x58] sm:$0xff] }
  0x14   :  { %170 = vmatpush.msra.mxu3 %v161_v26  ;;  %v200_v48 = vld [vmem:[%s409_s6 + $0x60] sm:$0xff]  ;;  %v198_v50 = vld [vmem:[%s409_s6 + $0x50] sm:$0xff]  ;;  %v197_v51 = vld [vmem:[%s409_s6 + $0x48] sm:$0xff] }
  0x15   :  { %235 = vmatmul.msk.f32.vlgmr.msrb.gmra.mxu0 %vm77_vm2, %v46_v13  ;;  %134 = vmatpush.msra.mxu2 %v117_v14  ;;  %v196_v52 = vld [vmem:[%s409_s6 + $0x40] sm:$0xff]  ;;  %v195_v53 = vld [vmem:[%s409_s6 + $0x38] sm:$0xff]  ;;  %v194_v54 = vld [vmem:[%s409_s6 + $0x30] sm:$0xff] }
  0x16   :  { %171 = vmatpush.msra.mxu3 %v160_v27  ;;  %207 = vmatpush.msra.mxu1 %v202_v46  ;;  %v193_v55 = vld [vmem:[%s409_s6 + $0x28] sm:$0xff]  ;;  %v192_v56 = vld [vmem:[%s409_s6 + $0x20] sm:$0xff]  ;;  %v191_v57 = vld [vmem:[%s409_s6 + $0x18] sm:$0xff] }
  0x17   :  { %135 = vmatpush.msra.mxu2 %v116_v15  ;;  %v240_v58 = vld [vmem:[%s408_s5 + $0x1] ss:$0 sm:$0xff]  ;;  %v190_v62 = vld [vmem:[%s409_s6 + $0x10] sm:$0xff]  ;;  %v189_v63 = vld [vmem:[%s409_s6 + $0x8] sm:$0xff] }
  0x18   :  { %172 = vmatpush.msra.mxu3 %v159_v28  ;;  %208 = vmatpush.msra.mxu1 %v201_v47  ;;  %v188_v0 = vld [vmem:[%s409_s6] sm:$0xff] }
  0x19   :  { %136 = vmatpush.msra.mxu2 %v115_v16  ;;  %v241_v1 = vld [vmem:[%s408_s5 + $0x2] ss:$0 sm:$0xff] }
  0x1a   :  { %173 = vmatpush.msra.mxu3 %v158_v29  ;;  %209 = vmatpush.msra.mxu1 %v200_v48 }
  0x1b   :  { %137 = vmatpush.msra.mxu2 %v114_v17 }
  0x1c   :  { %174 = vmatpush.msra.mxu3 %v157_v30  ;;  %210 = vmatpush.msra.mxu1 %v199_v49 }
  0x1d   :  { %138 = vmatpush.msra.mxu2 %v113_v18 }
  0x1e   :  { %175 = vmatpush.msra.mxu3 %v156_v31  ;;  %211 = vmatpush.msra.mxu1 %v198_v50 }
  0x1f   :  { %139 = vmatpush.msra.mxu2 %v112_v19 }
  0x20   :  { %176 = vmatpush.msra.mxu3 %v155_v32  ;;  %212 = vmatpush.msra.mxu1 %v197_v51 }
  0x21   :  { %140 = vmatpush.msra.mxu2 %v111_v20 }
  0x22   :  { %177 = vmatpush.msra.mxu3 %v154_v34  ;;  %213 = vmatpush.msra.mxu1 %v196_v52 }
  0x23   :  { %141 = vmatpush.msra.mxu2 %v110_v21 }
  0x24   :  { %178 = vmatpush.msra.mxu3 %v153_v35  ;;  %214 = vmatpush.msra.mxu1 %v195_v53 }
  0x25   :  { %142 = vmatpush.msra.mxu2 %v109_v22 }
  0x26   :  { %179 = vmatpush.msra.mxu3 %v152_v36  ;;  %215 = vmatpush.msra.mxu1 %v194_v54 }
  0x28   :  { %180 = vmatpush.msra.mxu3 %v151_v42  ;;  %216 = vmatpush.msra.mxu1 %v193_v55 }
  0x2a   :  { %181 = vmatpush.msra.mxu3 %v150_v43  ;;  %217 = vmatpush.msra.mxu1 %v192_v56 }
  0x2c   :  { %182 = vmatpush.msra.mxu3 %v149_v44  ;;  %218 = vmatpush.msra.mxu1 %v191_v57 }
  0x2e   :  { %219 = vmatpush.msra.mxu1 %v190_v62 }
  0x30   :  { %220 = vmatpush.msra.mxu1 %v189_v63 }
  0x32   :  { %221 = vmatpush.msra.mxu1 %v188_v0 }
  0x8a   :  { %v74_v33 = vpop.f32.mrf.mxu0 }
  0x92   :  { %v102_v38 = vpop.f32.mrf.mxu0 }
  0x93   :  { %v103_v39 = vadd.f32 %v102_v38, %v74_v33 }
  0x95   :  { %v107_v40 = vadd.f32 %v239_v37, %v103_v39 }
  0x97   :  { %v108_v41 = vmax.f32 %v107_v40, 0.0 }
  0x99   :  { %143 = vmatmul.f32.vlgmr.msra.gmra.mxu2 %v108_v41 }
 0x11c   :  { %v144_v59 = vpop.f32.mrf.mxu2 }
 0x11d   :  { %v145_v60 = vadd.f32 %v240_v58, %v144_v59 }
 0x11f   :  { %v147_v61 = vmax.f32 %v145_v60, 0.0 }
 0x121   :  { %183 = vmatmul.f32.vlgmr.msra.gmra.mxu3 %v147_v61 }
 0x1a4   :  { %v184_v2 = vpop.f32.mrf.mxu3 }
 0x1a5   :  { %v185_v3 = vadd.f32 %v241_v1, %v184_v2 }
 0x1a7   :  { %v187_v4 = vmax.f32 %v185_v3, 0.0 }
 0x1a9   :  { %222 = vmatmul.f32.vlgmr.msra.gmra.mxu1 %v187_v4 }
 0x226   :  { %v223_v6 = vpop.f32.mrf.mxu1 }
 0x227   :  { %v224_v7 = vadd.f32 %v223_v6, %v205_v5 }
 0x229   :  { %227 = vst.msk [vmem:[%s411_s8] sm:$0xff] %vm226_vm3, %v224_v7 }
 0x22a   :  { %232 = vsyncpa [#allocation4], 1 }

</bundles_post_ra>
